<compile_context>
chip_gen: v5e
topology: v5e:2x2
jax: 0.10.0
libtpu: 0.0.40
codegen_flags: <defaults>
</compile_context>

<pallas_src>
import jax
import jax.numpy as jnp
from jax.experimental import pallas as pl
from jax.experimental.pallas import tpu as pltpu


def _disc_lookup_kernel(idx_ref, tab_ref, out_ref):
    """Lane-dense logit-table lookup for one 128-wide batch tile.

    idx_ref : (1, TB) int32   token indices in [0, V)        [VMEM]
    tab_ref : (V, 1)  float32 fully-folded per-index logits  [VMEM]
    out_ref : (1, TB) float32 logits, lane-dense             [VMEM]
    """
    idx = idx_ref[...]                                      # (1, TB) int32
    tab = tab_ref[...]                                      # (V, 1)  f32
    V = tab.shape[0]
    TB = idx.shape[1]

    # True selection (no 0*NaN hazard): sel[v, b] = tab[v] if v == idx[b] else 0
    row = jax.lax.broadcasted_iota(jnp.int32, (V, TB), 0)   # (V, TB)
    sel = jnp.where(row == idx, tab, jnp.float32(0.0))      # (V, TB)

    # Exactly one nonzero per lane column -> sublane reduce gives the lookup.
    out_ref[...] = jnp.sum(sel, axis=0, keepdims=True)      # (1, TB)


def fold_discriminator_params(table, w1, b1, w2, b2):
    """Fold Embedding -> Linear -> LeakyReLU -> Linear into a (V, 1) table.

    Call this ONCE per weight update (it is O(V * D^2)); the per-batch forward
    pass then only needs the returned table.
    """
    table = table.astype(jnp.float32)
    h = table @ w1.astype(jnp.float32).T + b1.astype(jnp.float32)   # (V, D)
    h = jnp.where(h > 0, h, jnp.float32(0.01) * h)                   # LeakyReLU
    logits = h @ w2.astype(jnp.float32).T + b2.astype(jnp.float32)   # (V, 1)
    return logits.astype(jnp.float32)


def discriminator_forward(idx, logit_table, *, lane_tile=128):
    """Per-batch forward: logits[b] = logit_table[idx[b]].

    idx         : (B,) int32
    logit_table : (V, 1) float32 from fold_discriminator_params
    returns (B, 1) float32 (matches the PyTorch module's output).
    """
    B = idx.shape[0]
    V = logit_table.shape[0]

    # Pad batch to a multiple of 128 so every lane in every vreg / store is
    # live (index 0 padding is in-range; padded outputs are sliced away).
    b_pad = ((B + lane_tile - 1) // lane_tile) * lane_tile
    idx_row = jnp.zeros((1, b_pad), jnp.int32).at[0, :B].set(idx.astype(jnp.int32))

    grid = (b_pad // lane_tile,)
    out_row = pl.pallas_call(
        _disc_lookup_kernel,
        out_shape=jax.ShapeDtypeStruct((1, b_pad), jnp.float32),
        grid_spec=pltpu.PrefetchScalarGridSpec(
            num_scalar_prefetch=0,
            grid=grid,
            in_specs=[
                pl.BlockSpec((1, lane_tile), lambda i: (0, i)),   # idx tile
                pl.BlockSpec((V, 1), lambda i: (0, 0)),           # full table
            ],
            out_specs=pl.BlockSpec((1, lane_tile), lambda i: (0, i)),
        ),
        compiler_params=pltpu.CompilerParams(
            dimension_semantics=("parallel",),   # v7x: 2 TCs split batch tiles
        ),
    )(idx_row, logit_table)

    return out_row[0, :B].reshape(B, 1)


if __name__ == "__main__":
    # Small, deterministic problem: data_dim = 8 -> vocab = 2**8 = 256.
    data_dim = 8
    vocab = 2 ** data_dim
    batch = 16

    key = jax.random.PRNGKey(0)
    k_idx, k_emb, k_w1, k_b1, k_w2, k_b2 = jax.random.split(key, 6)

    # Deterministic synthetic parameters (shapes match nn.Module __init__).
    idx = jax.random.randint(k_idx, (batch,), 0, vocab, dtype=jnp.int32)
    table = jax.random.normal(k_emb, (vocab, data_dim), dtype=jnp.float32)
    # nn.Linear(data_dim, data_dim): weight (out, in), bias (out,)
    w1 = jax.random.normal(k_w1, (data_dim, data_dim), dtype=jnp.float32) * 0.3
    b1 = jax.random.normal(k_b1, (data_dim,), dtype=jnp.float32) * 0.1
    # nn.Linear(data_dim, 1): weight (1, data_dim), bias (1,)
    w2 = jax.random.normal(k_w2, (1, data_dim), dtype=jnp.float32) * 0.3
    b2 = jax.random.normal(k_b2, (1,), dtype=jnp.float32) * 0.1

    # Once-per-weight-update fold, then the per-batch Pallas forward.
    logit_table = fold_discriminator_params(table, w1, b1, w2, b2)
    out = discriminator_forward(idx, logit_table)
    out = jax.block_until_ready(out)

    # Pure-JAX reference (same math as the PyTorch module).
    emb_ref = table[idx]                                   # (B, D)
    h_ref = emb_ref @ w1.T + b1
    h_ref = jnp.where(h_ref > 0, h_ref, 0.01 * h_ref)
    ref = h_ref @ w2.T + b2                                # (B, 1)

    assert out.shape == (batch, 1), out.shape
    assert jnp.allclose(out, ref, atol=1e-4, rtol=1e-4), (out, ref)

    print("KERNEL_OK")
</pallas_src>

<mosaic_0001>
module attributes {stable_mosaic.version = 11 : i64} {
  func.func @_disc_lookup_kernel(%arg0: i32, %arg1: memref<1x128xi32, #tpu.memory_space<vmem>>, %arg2: memref<256x1xf32, #tpu.memory_space<vmem>>, %arg3: memref<1x128xf32, #tpu.memory_space<vmem>>) attributes {dimension_semantics = [#tpu.dimension_semantics<parallel>], iteration_bounds = array<i64: 1>, scalar_prefetch = 0 : i64, scratch_operands = 0 : i64, tpu.core_type = #tpu.core_type<tc>, window_params = [{transform_indices = @transform_0, window_bounds = array<i64: 1, 128>}, {pipeline_mode = #tpu.pipeline_mode<synchronous>, transform_indices = @transform_1, window_bounds = array<i64: 256, 1>}, {transform_indices = @transform_2, window_bounds = array<i64: 1, 128>}]} {
    %c0 = arith.constant 0 : index
    %c0_0 = arith.constant 0 : index
    %0 = vector.load %arg1[%c0, %c0_0] : memref<1x128xi32, #tpu.memory_space<vmem>>, vector<1x128xi32>
    %c0_1 = arith.constant 0 : index
    %c0_2 = arith.constant 0 : index
    %1 = vector.load %arg2[%c0_1, %c0_2] : memref<256x1xf32, #tpu.memory_space<vmem>>, vector<256x1xf32>
    %2 = tpu.iota {dimensions = array<i32: 0>} : vector<256x128xi32>
    %3 = vector.broadcast %0 : vector<1x128xi32> to vector<256x128xi32>
    %4 = arith.cmpi eq, %2, %3 : vector<256x128xi32>
    %cst = arith.constant 0.000000e+00 : f32
    %5 = vector.shape_cast %1 : vector<256x1xf32> to vector<256x1xf32>
    %6 = vector.broadcast %5 : vector<256x1xf32> to vector<256x128xf32>
    %7 = vector.broadcast %cst : f32 to vector<256x128xf32>
    %8 = arith.select %4, %6, %7 : vector<256x128xi1>, vector<256x128xf32>
    %cst_3 = arith.constant dense<0.000000e+00> : vector<128xf32>
    %9 = vector.multi_reduction <add>, %8, %cst_3 [0] : vector<256x128xf32> to vector<128xf32>
    %10 = vector.shape_cast %9 : vector<128xf32> to vector<1x128xf32>
    %c0_4 = arith.constant 0 : index
    %c0_5 = arith.constant 0 : index
    %11 = vector.load %arg3[%c0_4, %c0_5] : memref<1x128xf32, #tpu.memory_space<vmem>>, vector<1x128xf32>
    tpu.vector_store %arg3[%c0_4, %c0_5], %10 {strides = array<i32>} : memref<1x128xf32, #tpu.memory_space<vmem>>, vector<1x128xf32>,
    return
  }
  func.func @transform_0(%arg0: i32) -> (i32, i32) {
    %c0_i32 = arith.constant 0 : i32
    %c0_i32_0 = arith.constant 0 : i32
    return %c0_i32, %arg0 : i32, i32
  }
  func.func @transform_1(%arg0: i32) -> (i32, i32) {
    %c0_i32 = arith.constant 0 : i32
    %c0_i32_0 = arith.constant 0 : i32
    %c0_i32_1 = arith.constant 0 : i32
    return %c0_i32, %c0_i32_0 : i32, i32
  }
  func.func @transform_2(%arg0: i32) -> (i32, i32) {
    %c0_i32 = arith.constant 0 : i32
    %c0_i32_0 = arith.constant 0 : i32
    return %c0_i32, %arg0 : i32, i32
  }
}

</mosaic_0001>

<bundles_post_ra>
// kernel: tpu_custom_call.1
= control target key start
LH: loop header
LB: loop body
LE: loop exit
PB: predicated region body
PF: predicated region fallthrough
CT: control target
= control target key end

     0   :  { %v389_v3 = vmov 0   ;;  %s576_s0 = inlined_call_operand.vmem [shape: s32[1,128], index: 0, kind: input, shape index: {}]   ;;  %s577_s1 = inlined_call_operand.vmem [shape: f32[256,1], index: 1, kind: input, shape index: {}]   ;;  %s578_s2 = inlined_call_operand.hbm [shape: f32[1,128], index: 2, kind: output, shape index: {}]  }
   0x1   :  { %v17_v0 = vld [vmem:[%s577_s1 + $0x20] sm:$0xff]  ;;  %v15_v1 = vld [vmem:[%s577_s1 + $0x10] sm:$0xff]  ;;  %361 = vset.pattern.permute.xlu2 %v389_v3  ;;  %360 = vset.pattern.permute.xlu1 %v389_v3 }
   0x2   :  { %v13_v2 = vld [vmem:[%s577_s1] sm:$0xff]  ;;  %359 = vset.pattern.permute.xlu0 %v389_v3  ;;  %133 = vperm.xlu2 %361, %v17_v0  }
   0x3   :  { %123 = vperm.xlu1 %360, %v15_v1   ;;  %113 = vperm.xlu0 %359, %v13_v2  }
   0x4   :  { %7 = vsyncpa [#allocation3], 0  ;;  %v18_v4 = vld [vmem:[%s577_s1 + $0x28] sm:$0xff]  ;;  %v16_v5 = vld [vmem:[%s577_s1 + $0x18] sm:$0xff]  ;;  %v45_v35 = vlaneseq  ;;  %s348_s21 = sshll.u32 %s578_s2, 4  ;;  %s349_s21 = int_to_ptr.hbm [resolvable:$true] %s348_s21 }
   0x5   :  { %v14_v6 = vld [vmem:[%s577_s1 + $0x8] sm:$0xff]  ;;  %v21_v7 = vld [vmem:[%s577_s1 + $0x40] sm:$0xff]  ;;  %v20_v8 = vld [vmem:[%s577_s1 + $0x38] sm:$0xff] }
   0x6   :  { %v19_v9 = vld [vmem:[%s577_s1 + $0x30] sm:$0xff]  ;;  %v24_v10 = vld [vmem:[%s577_s1 + $0x58] sm:$0xff]  ;;  %v22_v12 = vld [vmem:[%s577_s1 + $0x48] sm:$0xff]  ;;  %v502_v36 = vshrl.u32 %v45_v35, 7 }
   0x7   :  { %v23_v11 = vld [vmem:[%s577_s1 + $0x50] sm:$0xff]  ;;  %v26_v14 = vld [vmem:[%s577_s1 + $0x68] sm:$0xff]  ;;  %v25_v15 = vld [vmem:[%s577_s1 + $0x60] sm:$0xff] }
   0x8   :  { %v27_v13 = vld [vmem:[%s577_s1 + $0x70] sm:$0xff]  ;;  %v30_v16 = vld [vmem:[%s577_s1 + $0x88] sm:$0xff]  ;;  %v29_v17 = vld [vmem:[%s577_s1 + $0x80] sm:$0xff]  ;;  %v47_v40 = vadd.s32 8, %v502_v36  ;;  %v48_v41 = vadd.s32 16, %v502_v36  ;;  %v49_v43 = vadd.s32 24, %v502_v36 }
   0x9   :  { %v28_v18 = vld [vmem:[%s577_s1 + $0x78] sm:$0xff]  ;;  %v33_v19 = vld [vmem:[%s577_s1 + $0xa0] sm:$0xff]  ;;  %v31_v21 = vld [vmem:[%s577_s1 + $0x90] sm:$0xff]  ;;  %v50_v44 = vadd.s32 32, %v502_v36  ;;  %v51_v49 = vadd.s32 40, %v502_v36  ;;  %v52_v53 = vadd.s32 48, %v502_v36 }
   0xa   :  { %138 = vperm.xlu2 %361, %v18_v4   ;;  %v32_v20 = vld [vmem:[%s577_s1 + $0x98] sm:$0xff]  ;;  %v35_v23 = vld [vmem:[%s577_s1 + $0xb0] sm:$0xff]  ;;  %v34_v24 = vld [vmem:[%s577_s1 + $0xa8] sm:$0xff]  ;;  %v53_v56 = vadd.s32 56, %v502_v36  ;;  %v54_v59 = vadd.s32 64, %v502_v36  ;;  %v55_v1 = vadd.s32 72, %v502_v36 }
   0xb   :  { %128 = vperm.xlu1 %360, %v16_v5   ;;  %118 = vperm.xlu0 %359, %v14_v6   ;;  %v36_v22 = vld [vmem:[%s577_s1 + $0xb8] sm:$0xff]  ;;  %v39_v25 = vld [vmem:[%s577_s1 + $0xd0] sm:$0xff]  ;;  %v38_v26 = vld [vmem:[%s577_s1 + $0xc8] sm:$0xff]  ;;  %v56_v4 = vadd.s32 80, %v502_v36 }
   0xc   :  { %v37_v27 = vld [vmem:[%s577_s1 + $0xc0] sm:$0xff]  ;;  %v42_v28 = vld [vmem:[%s577_s1 + $0xe8] sm:$0xff]  ;;  %v40_v30 = vld [vmem:[%s577_s1 + $0xd8] sm:$0xff] }
   0xd   :  { %v41_v29 = vld [vmem:[%s577_s1 + $0xe0] sm:$0xff]  ;;  %v44_v31 = vld [vmem:[%s577_s1 + $0xf8] sm:$0xff]  ;;  %v43_v32 = vld [vmem:[%s577_s1 + $0xf0] sm:$0xff] }
   0xe   :  { %v507_v39 = vld [vmem:[%s576_s0] ss:$0 sm:$0xff]  ;;  %s390_s0 = smov [#allocation2]  }
   0xf   :  { %vm79_vm0 = vcmp.eq.s32.totalorder %v502_v36, %v507_v39  ;;  %vm80_vm1 = vcmp.eq.s32.totalorder %v47_v40, %v507_v39  ;;  %vm81_vm2 = vcmp.eq.s32.totalorder %v48_v41, %v507_v39  ;;  %vm82_vm3 = vcmp.eq.s32.totalorder %v49_v43, %v507_v39  ;;  %s346_s1 = sshll.u32 %s390_s0, 4  ;;  %s347_s1 = int_to_ptr.vmem [resolvable:$true] %s346_s1 }
  0x10   :  { %vm83_vm4 = vcmp.eq.s32.totalorder %v50_v44, %v507_v39  ;;  %vm84_vm5 = vcmp.eq.s32.totalorder %v51_v49, %v507_v39  ;;  %vm85_vm6 = vcmp.eq.s32.totalorder %v52_v53, %v507_v39  ;;  %vm86_vm7 = vcmp.eq.s32.totalorder %v53_v56, %v507_v39 }
  0x11   :  { %vm87_vm8 = vcmp.eq.s32.totalorder %v54_v59, %v507_v39  ;;  %vm88_vm9 = vcmp.eq.s32.totalorder %v55_v1, %v507_v39  ;;  %vm89_vm10 = vcmp.eq.s32.totalorder %v56_v4, %v507_v39  ;;  %v64_v40 = vadd.s32 144, %v502_v36 }
  0x12   :  { %153 = vperm.xlu2 %361, %v21_v7   ;;  %v65_v43 = vadd.s32 152, %v502_v36 }
  0x13   :  { %148 = vperm.xlu1 %360, %v20_v8   ;;  %143 = vperm.xlu0 %359, %v19_v9   ;;  %v57_v8 = vadd.s32 88, %v502_v36 }
  0x15   :  { %vm90_vm11 = vcmp.eq.s32.totalorder %v57_v8, %v507_v39 }
  0x1a   :  { %168 = vperm.xlu2 %361, %v24_v10  }
  0x1b   :  { %163 = vperm.xlu1 %360, %v23_v11   ;;  %158 = vperm.xlu0 %359, %v22_v12  }
  0x22   :  { %183 = vperm.xlu2 %361, %v27_v13  }
  0x23   :  { %178 = vperm.xlu1 %360, %v26_v14   ;;  %173 = vperm.xlu0 %359, %v25_v15   ;;  %v58_v15 = vadd.s32 96, %v502_v36 }
  0x25   :  { %vm91_vm12 = vcmp.eq.s32.totalorder %v58_v15, %v507_v39  ;;  %v74_v15 = vadd.s32 224, %v502_v36 }
  0x2a   :  { %198 = vperm.xlu2 %361, %v30_v16  }
  0x2b   :  { %193 = vperm.xlu1 %360, %v29_v17   ;;  %188 = vperm.xlu0 %359, %v28_v18   ;;  %v59_v18 = vadd.s32 104, %v502_v36 }
  0x2d   :  { %vm92_vm13 = vcmp.eq.s32.totalorder %v59_v18, %v507_v39 }
  0x32   :  { %213 = vperm.xlu2 %361, %v33_v19  }
  0x33   :  { %208 = vperm.xlu1 %360, %v32_v20   ;;  %203 = vperm.xlu0 %359, %v31_v21   ;;  %v60_v20 = vadd.s32 112, %v502_v36 }
  0x35   :  { %vm93_vm14 = vcmp.eq.s32.totalorder %v60_v20, %v507_v39 }
  0x3a   :  { %228 = vperm.xlu2 %361, %v36_v22  }
  0x3b   :  { %223 = vperm.xlu1 %360, %v35_v23   ;;  %218 = vperm.xlu0 %359, %v34_v24  }
  0x42   :  { %243 = vperm.xlu2 %361, %v39_v25  }
  0x43   :  { %238 = vperm.xlu1 %360, %v38_v26   ;;  %233 = vperm.xlu0 %359, %v37_v27   ;;  %v61_v26 = vadd.s32 120, %v502_v36 }
  0x45   :  { %vm94_vm15 = vcmp.eq.s32.totalorder %v61_v26, %v507_v39 }
  0x4a   :  { %258 = vperm.xlu2 %361, %v42_v28  }
  0x4b   :  { %253 = vperm.xlu1 %360, %v41_v29   ;;  %248 = vperm.xlu0 %359, %v40_v30   ;;  %v62_v30 = vadd.s32 128, %v502_v36 }
  0x53   :  { %268 = vperm.xlu1 %360, %v44_v31   ;;  %263 = vperm.xlu0 %359, %v43_v32   ;;  %v63_v32 = vadd.s32 136, %v502_v36 }
  0x5c   :  { %v134_v33 = vpop.permute.xlu2 %133 }
  0x5d   :  { %v275_v57 = vsel %vm83_vm4, %v134_v33, 0.0 }
  0x64   :  { %v139_v34 = vpop.permute.xlu2 %138 }
  0x65   :  { %v276_v63 = vsel %vm84_vm5, %v139_v34, 0.0 }
  0x6c   :  { %v154_v42 = vpop.permute.xlu2 %153 }
  0x6d   :  { %v279_v7 = vsel %vm87_vm8, %v154_v42, 0.0 }
  0x74   :  { %v169_v58 = vpop.permute.xlu2 %168 }
  0x75   :  { %v124_v37 = vpop.permute.xlu1 %123  ;;  %v114_v38 = vpop.permute.xlu0 %113  ;;  %v282_v19 = vsel %vm90_vm11, %v169_v58, 0.0  ;;  %v69_v58 = vadd.s32 184, %v502_v36 }
  0x76   :  { %v271_v47 = vsel %vm79_vm0, %v114_v38, 0.0  ;;  %v273_v51 = vsel %vm81_vm2, %v124_v37, 0.0  ;;  %vm95_vm0 = vcmp.eq.s32.totalorder %v62_v30, %v507_v39  ;;  %vm97_vm2 = vcmp.eq.s32.totalorder %v64_v40, %v507_v39 }
  0x7c   :  { %v184_v12 = vpop.permute.xlu2 %183 }
  0x7d   :  { %v129_v45 = vpop.permute.xlu1 %128  ;;  %v119_v46 = vpop.permute.xlu0 %118  ;;  %v285_v31 = vsel %vm93_vm14, %v184_v12, 0.0  ;;  %v73_v12 = vadd.s32 216, %v502_v36 }
  0x7e   :  { %v272_v48 = vsel %vm80_vm1, %v119_v46, 0.0  ;;  %v274_v54 = vsel %vm82_vm3, %v129_v45, 0.0  ;;  %vm96_vm1 = vcmp.eq.s32.totalorder %v63_v32, %v507_v39  ;;  %v66_v46 = vadd.s32 160, %v502_v36 }
  0x7f   :  { %v303_v50 = vadd.f32 %v272_v48, %v271_v47  ;;  %vm98_vm3 = vcmp.eq.s32.totalorder %v65_v43, %v507_v39  ;;  %vm106_vm11 = vcmp.eq.s32.totalorder %v73_v12, %v507_v39 }
  0x80   :  { %vm99_vm4 = vcmp.eq.s32.totalorder %v66_v46, %v507_v39 }
  0x81   :  { %v304_v52 = vadd.f32 %v303_v50, %v273_v51 }
  0x83   :  { %v305_v55 = vadd.f32 %v304_v52, %v274_v54  ;;  %v67_v52 = vadd.s32 168, %v502_v36 }
  0x84   :  { %v199_v27 = vpop.permute.xlu2 %198 }
  0x85   :  { %v149_v60 = vpop.permute.xlu1 %148  ;;  %v144_v61 = vpop.permute.xlu0 %143  ;;  %v306_v62 = vadd.f32 %v305_v55, %v275_v57  ;;  %v288_v45 = vsel %vm96_vm1, %v199_v27, 0.0  ;;  %v68_v55 = vadd.s32 176, %v502_v36  ;;  %vm100_vm5 = vcmp.eq.s32.totalorder %v67_v52, %v507_v39 }
  0x86   :  { %v277_v2 = vsel %vm85_vm6, %v144_v61, 0.0  ;;  %v278_v5 = vsel %vm86_vm7, %v149_v60, 0.0  ;;  %vm102_vm7 = vcmp.eq.s32.totalorder %v69_v58, %v507_v39  ;;  %v77_v27 = vadd.s32 248, %v502_v36 }
  0x87   :  { %v307_v0 = vadd.f32 %v306_v62, %v276_v63  ;;  %vm101_vm6 = vcmp.eq.s32.totalorder %v68_v55, %v507_v39 }
  0x89   :  { %v308_v3 = vadd.f32 %v307_v0, %v277_v2  ;;  %v70_v0 = vadd.s32 192, %v502_v36 }
  0x8b   :  { %v309_v6 = vadd.f32 %v308_v3, %v278_v5  ;;  %v71_v3 = vadd.s32 200, %v502_v36  ;;  %vm103_vm8 = vcmp.eq.s32.totalorder %v70_v0, %v507_v39  ;;  %v72_v5 = vadd.s32 208, %v502_v36 }
  0x8c   :  { %v214_v44 = vpop.permute.xlu2 %213 }
  0x8d   :  { %v164_v9 = vpop.permute.xlu1 %163  ;;  %v159_v10 = vpop.permute.xlu0 %158  ;;  %v310_v11 = vadd.f32 %v309_v6, %v279_v7  ;;  %v291_v56 = vsel %vm99_vm4, %v214_v44, 0.0 }
  0x8e   :  { %v280_v13 = vsel %vm88_vm9, %v159_v10, 0.0  ;;  %v281_v16 = vsel %vm89_vm10, %v164_v9, 0.0  ;;  %vm104_vm9 = vcmp.eq.s32.totalorder %v71_v3, %v507_v39  ;;  %vm105_vm10 = vcmp.eq.s32.totalorder %v72_v5, %v507_v39 }
  0x8f   :  { %v311_v14 = vadd.f32 %v310_v11, %v280_v13 }
  0x91   :  { %v312_v17 = vadd.f32 %v311_v14, %v281_v16 }
  0x93   :  { %v313_v23 = vadd.f32 %v312_v17, %v282_v19  ;;  %v75_v17 = vadd.s32 232, %v502_v36 }
  0x94   :  { %v229_v57 = vpop.permute.xlu2 %228 }
  0x95   :  { %v179_v21 = vpop.permute.xlu1 %178  ;;  %v174_v22 = vpop.permute.xlu0 %173  ;;  %v294_v4 = vsel %vm102_vm7, %v229_v57, 0.0 }
  0x96   :  { %v283_v24 = vsel %vm91_vm12, %v174_v22, 0.0  ;;  %v284_v28 = vsel %vm92_vm13, %v179_v21, 0.0  ;;  %vm107_vm12 = vcmp.eq.s32.totalorder %v74_v15, %v507_v39  ;;  %vm108_vm13 = vcmp.eq.s32.totalorder %v75_v17, %v507_v39 }
  0x97   :  { %v314_v25 = vadd.f32 %v313_v23, %v283_v24  ;;  %v76_v23 = vadd.s32 240, %v502_v36 }
  0x99   :  { %v315_v29 = vadd.f32 %v314_v25, %v284_v28  ;;  %vm109_vm14 = vcmp.eq.s32.totalorder %v76_v23, %v507_v39 }
  0x9b   :  { %v316_v35 = vadd.f32 %v315_v29, %v285_v31 }
  0x9c   :  { %v244_v10 = vpop.permute.xlu2 %243 }
  0x9d   :  { %v194_v33 = vpop.permute.xlu1 %193  ;;  %v189_v34 = vpop.permute.xlu0 %188  ;;  %v297_v16 = vsel %vm105_vm10, %v244_v10, 0.0 }
  0x9e   :  { %v286_v37 = vsel %vm94_vm15, %v189_v34, 0.0  ;;  %v287_v41 = vsel %vm95_vm0, %v194_v33, 0.0  ;;  %vm110_vm15 = vcmp.eq.s32.totalorder %v77_v27, %v507_v39 }
  0x9f   :  { %v317_v38 = vadd.f32 %v316_v35, %v286_v37 }
  0xa1   :  { %v318_v42 = vadd.f32 %v317_v38, %v287_v41 }
  0xa3   :  { %v319_v49 = vadd.f32 %v318_v42, %v288_v45 }
  0xa4   :  { %v259_v25 = vpop.permute.xlu2 %258 }
  0xa5   :  { %v209_v47 = vpop.permute.xlu1 %208  ;;  %v204_v48 = vpop.permute.xlu0 %203  ;;  %v300_v28 = vsel %vm108_vm13, %v259_v25, 0.0 }
  0xa6   :  { %v289_v50 = vsel %vm97_vm2, %v204_v48, 0.0  ;;  %v290_v53 = vsel %vm98_vm3, %v209_v47, 0.0 }
  0xa7   :  { %v320_v51 = vadd.f32 %v319_v49, %v289_v50 }
  0xa9   :  { %v321_v54 = vadd.f32 %v320_v51, %v290_v53 }
  0xab   :  { %v322_v61 = vadd.f32 %v321_v54, %v291_v56 }
  0xad   :  { %v224_v59 = vpop.permute.xlu1 %223  ;;  %v219_v60 = vpop.permute.xlu0 %218 }
  0xae   :  { %v292_v62 = vsel %vm100_vm5, %v219_v60, 0.0  ;;  %v293_v1 = vsel %vm101_vm6, %v224_v59, 0.0 }
  0xaf   :  { %v323_v63 = vadd.f32 %v322_v61, %v292_v62 }
  0xb1   :  { %v324_v2 = vadd.f32 %v323_v63, %v293_v1 }
  0xb3   :  { %v325_v8 = vadd.f32 %v324_v2, %v294_v4 }
  0xb5   :  { %v239_v6 = vpop.permute.xlu1 %238  ;;  %v234_v7 = vpop.permute.xlu0 %233 }
  0xb6   :  { %v295_v9 = vsel %vm103_vm8, %v234_v7, 0.0  ;;  %v296_v13 = vsel %vm104_vm9, %v239_v6, 0.0 }
  0xb7   :  { %v326_v11 = vadd.f32 %v325_v8, %v295_v9 }
  0xb9   :  { %v327_v14 = vadd.f32 %v326_v11, %v296_v13 }
  0xbb   :  { %v328_v20 = vadd.f32 %v327_v14, %v297_v16 }
  0xbd   :  { %v254_v18 = vpop.permute.xlu1 %253  ;;  %v249_v19 = vpop.permute.xlu0 %248 }
  0xbe   :  { %v298_v21 = vsel %vm106_vm11, %v249_v19, 0.0  ;;  %v299_v24 = vsel %vm107_vm12, %v254_v18, 0.0 }
  0xbf   :  { %v329_v22 = vadd.f32 %v328_v20, %v298_v21 }
  0xc1   :  { %v330_v26 = vadd.f32 %v329_v22, %v299_v24 }
  0xc3   :  { %v331_v31 = vadd.f32 %v330_v26, %v300_v28 }
  0xc5   :  { %v269_v29 = vpop.permute.xlu1 %268  ;;  %v264_v30 = vpop.permute.xlu0 %263 }
  0xc6   :  { %v301_v32 = vsel %vm109_vm14, %v264_v30, 0.0  ;;  %v302_v34 = vsel %vm110_vm15, %v269_v29, 0.0 }
  0xc7   :  { %v332_v33 = vadd.f32 %v331_v31, %v301_v32 }
  0xc9   :  { %v333_v35 = vadd.f32 %v332_v33, %v302_v34 }
  0xcb   :  { %v334_v37 = vrot.slane %v333_v35, 4 }
  0xcd   :  { %v335_v38 = vadd.f32 %v334_v37, %v333_v35 }
  0xcf   :  { %v336_v40 = vrot.slane %v335_v38, 2 }
  0xd1   :  { %v337_v41 = vadd.f32 %v336_v40, %v335_v38 }
  0xd3   :  { %v338_v36 = vrot.slane %v337_v41, 1 }
  0xd5   :  { %v339_v42 = vadd.f32 %v338_v36, %v337_v41 }
  0xd7   :  { %340 = vst [vmem:[#allocation2] sm:$0x1] %v339_v42 }
  0xd8   :  { %351 = dma.vmem_to_hbm [thread:$0]  %s347_s1, 16, %s349_s21, [#allocation3]  }
  0xd9   :  { %387 = dma.done.wait [#allocation3], 16  }
  0xda   :  { %388 = vsyncadd [#allocation3], 4294967280 }
  0xdb   :  { %356 = vsyncpa [#allocation3], 1 }

</bundles_post_ra>
